<compile_context>
chip_gen: v5e
topology: v5e:2x2
jax: 0.10.0
libtpu: 0.0.40
codegen_flags: <defaults>
</compile_context>

<pallas_src>
import functools

import jax
import jax.numpy as jnp
from jax import lax
from jax.experimental import pallas as pl
from jax.experimental.pallas import tpu as pltpu

KERNEL_SIZE = 5  # default Autoformer moving-average window (odd)


@functools.lru_cache(maxsize=None)
def _chip_params():
    """(target input-block bytes, explicit VMEM limit) for this chip."""
    vmem = 64 << 20
    try:
        vmem = int(getattr(pltpu.get_tpu_info(), "vmem_capacity_bytes", 0)) or vmem
    except Exception:
        pass
    # 48 MiB limit on v7x (64 MiB VMEM), 96 MiB on v5e/v6e (128 MiB VMEM).
    vmem_limit = int(min(vmem * 3 // 4, 96 << 20))
    # ~3-4 MiB input tiles; live VMEM ~= 6x block (double-buffered I/O) plus a
    # few block-sized f32 intermediates, comfortably under the limit above.
    target = int(min(max(vmem_limit // 16, 1 << 20), 4 << 20))
    return target, vmem_limit


def _pick_tile(n, bytes_per_unit, target_bytes, align, min_steps=1):
    """Tile along one axis: a multiple of `align` (or the full extent), sized so
    tile*bytes_per_unit ~<= target_bytes, keeping >= min_steps grid steps when
    possible.  Non-divisor tiles are fine (cdiv grid, ragged edge is masked)."""
    if n <= align:
        return n
    if n * bytes_per_unit <= target_bytes and min_steps <= 1:
        return n
    by_bytes = max(1, target_bytes // max(1, bytes_per_unit))
    by_steps = max(1, -(-n // max(1, min_steps)))
    t = min(by_bytes, by_steps, n)
    t = max(align, (t // align) * align)
    return min(t, n)


def _decomp_kernel(x_ref, res_ref, mean_ref, *, kernel_size, seq_len, stride):
    """One block.  Time lives on axis 1 with `stride` elements per time step
    (stride=C for the flattened small-C layout, stride=1 for (tb, L, tc))."""
    K = kernel_size
    L = seq_len
    p = (K - 1) // 2
    period = L * stride
    inv_k = 1.0 / K

    xf = x_ref[...].astype(jnp.float32)  # single upcast (no-op for f32 inputs)

    def roll_t(a, t_shift):
        # out[.., t, ..] = a[.., (t + t_shift) mod L, ..] along axis 1.
        s = (-t_shift * stride) % period
        if s == 0:
            return a
        if a.ndim == 2:
            return pltpu.roll(a, shift=s, axis=1)          # lane rotate (XLU)
        hi = lax.slice_in_dim(a, period - s, period, axis=1)
        lo = lax.slice_in_dim(a, 0, period - s, axis=1)
        return lax.concatenate([hi, lo], dimension=1)       # sublane shuffle

    # --- circular K-tap windowed sum via log-doubling partial sums ---
    acc = None
    cur = xf
    length = 1
    offset = 0
    k = K
    while True:
        if k & 1:
            term = roll_t(cur, offset)
            acc = term if acc is None else acc + term
            offset += length
        k >>= 1
        if k == 0:
            break
        cur = cur + roll_t(cur, length)
        length *= 2
    mean_circ = roll_t(acc, -p) * inv_k  # center the window on t

    if p == 0:
        mean_final = mean_circ
    else:
        # Replicate-pad boundary fix: recompute only the first/last `p` time
        # rows exactly (narrow row slices), reassemble the block with a single
        # concatenate, and store once per output.
        def row(t):
            return lax.slice_in_dim(xf, t * stride, (t + 1) * stride, axis=1)

        row0 = row(0)
        row_last = row(L - 1)

        front = []
        n_front = min(p, L)
        run = row0
        hi = 0
        for t in range(n_front):
            t_hi = min(L - 1, t + p)
            while hi < t_hi:
                hi += 1
                run = run + row(hi)
            corr = run + float(p - t) * row0
            n_end = t + p - (L - 1)
            if n_end > 0:
                corr = corr + float(n_end) * row_last
            front.append(corr * inv_k)

        back = []
        back_lo = max(n_front, L - p)
        if back_lo < L:
            run = row_last
            lo = L - 1
            for t in range(L - 1, back_lo - 1, -1):
                t_lo = t - p
                while lo > t_lo:
                    lo -= 1
                    run = run + row(lo)
                corr = run + float(t + p - (L - 1)) * row_last
                back.append(corr * inv_k)
            back.reverse()

        pieces = list(front)
        if back_lo > n_front:
            pieces.append(lax.slice_in_dim(
                mean_circ, n_front * stride, back_lo * stride, axis=1))
        pieces.extend(back)
        mean_final = pieces[0] if len(pieces) == 1 else lax.concatenate(
            pieces, dimension=1)

    res_ref[...] = (xf - mean_final).astype(res_ref.dtype)
    mean_ref[...] = mean_final.astype(mean_ref.dtype)


def series_decomp(x: jax.Array, kernel_size: int = KERNEL_SIZE, *,
                  block_bytes: int | None = None):
    """x: (B, L, C) -> (res, moving_mean), both (B, L, C)."""
    if kernel_size % 2 != 1 or kernel_size < 1:
        # Even K changes the AvgPool1d output length; Autoformer uses odd windows.
        raise ValueError("series_decomp Pallas kernel requires an odd kernel_size")
    B, L, C = x.shape
    itemsize = jnp.dtype(x.dtype).itemsize
    target, vmem_limit = _chip_params()
    if block_bytes is not None:
        target = int(block_bytes)

    total_bytes = B * L * C * itemsize
    want_steps = 2 if total_bytes >= (1 << 20) else 1  # keep both cores busy

    cost = pl.CostEstimate(
        flops=(2 * kernel_size.bit_length() + 4) * B * L * C,
        transcendentals=0,
        bytes_accessed=3 * total_bytes,
    )

    row_bytes = L * C * itemsize
    use_flat = (C < 128) and (min(B, 8) * row_bytes <= target)

    if use_flat:
        # Contiguous reshape only (no HBM relayout): time goes to the lane axis
        # with element stride C; circular rolls in multiples of C are exactly
        # time rolls, and the boundary fix repairs the wrapped ends.
        xk = x.reshape(B, L * C)
        tb = _pick_tile(B, row_bytes, target, align=8, min_steps=want_steps)
        grid = (pl.cdiv(B, tb),)
        spec = pl.BlockSpec((tb, L * C), lambda b: (b, 0))
        dim_sem = ("parallel",)
        out_sds = jax.ShapeDtypeStruct((B, L * C), x.dtype)
        stride = C
    else:
        # Channels already lane-dense: natural layout, tile batch AND channels
        # so each block sits at the DMA-pipeline plateau.
        xk = x
        tc = _pick_tile(C, L * itemsize, target, align=128)
        c_steps = pl.cdiv(C, tc)
        tb = _pick_tile(B, L * tc * itemsize, target, align=1,
                        min_steps=want_steps if c_steps < 2 else 1)
        grid = (pl.cdiv(B, tb), c_steps)
        spec = pl.BlockSpec((tb, L, tc), lambda b, c: (b, 0, c))
        dim_sem = ("parallel", "parallel")
        out_sds = jax.ShapeDtypeStruct((B, L, C), x.dtype)
        stride = 1

    kernel = functools.partial(_decomp_kernel, kernel_size=kernel_size,
                               seq_len=L, stride=stride)
    res_k, mean_k = pl.pallas_call(
        kernel,
        out_shape=(out_sds, out_sds),
        grid_spec=pltpu.PrefetchScalarGridSpec(
            num_scalar_prefetch=0,
            grid=grid,
            in_specs=[spec],
            out_specs=(spec, spec),
        ),
        compiler_params=pltpu.CompilerParams(
            dimension_semantics=dim_sem,
            vmem_limit_bytes=vmem_limit,
        ),
        cost_estimate=cost,
    )(xk)

    if use_flat:
        res_k = res_k.reshape(B, L, C)
        mean_k = mean_k.reshape(B, L, C)
    return res_k, mean_k


def _reference(x, kernel_size):
    # Pure-JAX reference mirroring the PyTorch module exactly.
    pad = (kernel_size - 1) // 2
    front = jnp.repeat(x[:, 0:1, :], pad, axis=1)
    end = jnp.repeat(x[:, -1:, :], pad, axis=1)
    xp = jnp.concatenate([front, x, end], axis=1)  # (B, L+2*pad, C)
    L = x.shape[1]
    mean = jnp.mean(
        jnp.stack([xp[:, j:j + L, :] for j in range(kernel_size)], axis=0),
        axis=0)
    return x - mean, mean


if __name__ == "__main__":
    key = jax.random.PRNGKey(0)
    # (B, L, C, K, forced block bytes): exercises the lane-dense flat path
    # (small C), the Autoformer K=25 window with L == K-1 (no interior rows),
    # the C>=128 natural path, and forced tiling with ragged cdiv edges on
    # both the batch and channel grid axes.
    cases = [
        (2, 16, 8, 5, None),
        (3, 24, 7, 25, None),
        (2, 96, 256, 5, None),
        (13, 32, 10, 7, 16 << 10),
        (3, 128, 384, 9, 128 << 10),
    ]
    for i, (B, L, C, K, bb) in enumerate(cases):
        key, sub = jax.random.split(key)
        x = jax.random.normal(sub, (B, L, C), dtype=jnp.float32)

        res, mean = series_decomp(x, K, block_bytes=bb)
        jax.block_until_ready((res, mean))

        res_ref, mean_ref = _reference(x, K)
        assert jnp.allclose(mean, mean_ref, atol=1e-5, rtol=1e-5), f"mean mismatch (case {i})"
        assert jnp.allclose(res, res_ref, atol=1e-5, rtol=1e-5), f"res mismatch (case {i})"

    print("KERNEL_OK")
</pallas_src>

<mosaic_0001>
module attributes {stable_mosaic.version = 11 : i64} {
  func.func @_decomp_kernel(%arg0: i32, %arg1: memref<2x128xf32, #tpu.memory_space<vmem>>, %arg2: memref<2x128xf32, #tpu.memory_space<vmem>>, %arg3: memref<2x128xf32, #tpu.memory_space<vmem>>) attributes {dimension_semantics = [#tpu.dimension_semantics<parallel>], iteration_bounds = array<i64: 1>, scalar_prefetch = 0 : i64, scratch_operands = 0 : i64, tpu.core_type = #tpu.core_type<tc>, window_params = [{transform_indices = @transform_0, window_bounds = array<i64: 2, 128>}, {transform_indices = @transform_1, window_bounds = array<i64: 2, 128>}, {transform_indices = @transform_2, window_bounds = array<i64: 2, 128>}]} {
    %c0 = arith.constant 0 : index
    %c0_0 = arith.constant 0 : index
    %0 = vector.load %arg1[%c0, %c0_0] : memref<2x128xf32, #tpu.memory_space<vmem>>, vector<2x128xf32>
    %c120_i32 = arith.constant 120 : i32
    %1 = tpu.dynamic_rotate %0 by %c120_i32 dim 1 : vector<2x128xf32>, i32 -> vector<2x128xf32>
    %2 = arith.addf %0, %1 : vector<2x128xf32>
    %c112_i32 = arith.constant 112 : i32
    %3 = tpu.dynamic_rotate %2 by %c112_i32 dim 1 : vector<2x128xf32>, i32 -> vector<2x128xf32>
    %4 = arith.addf %2, %3 : vector<2x128xf32>
    %c120_i32_1 = arith.constant 120 : i32
    %5 = tpu.dynamic_rotate %4 by %c120_i32_1 dim 1 : vector<2x128xf32>, i32 -> vector<2x128xf32>
    %6 = arith.addf %0, %5 : vector<2x128xf32>
    %c16_i32 = arith.constant 16 : i32
    %7 = tpu.dynamic_rotate %6 by %c16_i32 dim 1 : vector<2x128xf32>, i32 -> vector<2x128xf32>
    %cst = arith.constant 2.000000e-01 : f32
    %8 = vector.broadcast %cst : f32 to vector<2x128xf32>
    %9 = arith.mulf %7, %8 : vector<2x128xf32>
    %10 = vector.extract_strided_slice %0 {offsets = [0, 0], sizes = [2, 8], strides = [1, 1]} : vector<2x128xf32> to vector<2x8xf32>
    %11 = vector.extract_strided_slice %0 {offsets = [0, 120], sizes = [2, 8], strides = [1, 1]} : vector<2x128xf32> to vector<2x8xf32>
    %12 = vector.extract_strided_slice %0 {offsets = [0, 8], sizes = [2, 8], strides = [1, 1]} : vector<2x128xf32> to vector<2x8xf32>
    %13 = arith.addf %10, %12 : vector<2x8xf32>
    %14 = vector.extract_strided_slice %0 {offsets = [0, 16], sizes = [2, 8], strides = [1, 1]} : vector<2x128xf32> to vector<2x8xf32>
    %15 = arith.addf %13, %14 : vector<2x8xf32>
    %cst_2 = arith.constant 2.000000e+00 : f32
    %16 = vector.broadcast %cst_2 : f32 to vector<2x8xf32>
    %17 = arith.mulf %16, %10 : vector<2x8xf32>
    %18 = arith.addf %15, %17 : vector<2x8xf32>
    %cst_3 = arith.constant 2.000000e-01 : f32
    %19 = vector.broadcast %cst_3 : f32 to vector<2x8xf32>
    %20 = arith.mulf %18, %19 : vector<2x8xf32>
    %21 = vector.extract_strided_slice %0 {offsets = [0, 24], sizes = [2, 8], strides = [1, 1]} : vector<2x128xf32> to vector<2x8xf32>
    %22 = arith.addf %15, %21 : vector<2x8xf32>
    %cst_4 = arith.constant 1.000000e+00 : f32
    %23 = vector.broadcast %cst_4 : f32 to vector<2x8xf32>
    %24 = arith.mulf %23, %10 : vector<2x8xf32>
    %25 = arith.addf %22, %24 : vector<2x8xf32>
    %cst_5 = arith.constant 2.000000e-01 : f32
    %26 = vector.broadcast %cst_5 : f32 to vector<2x8xf32>
    %27 = arith.mulf %25, %26 : vector<2x8xf32>
    %28 = vector.extract_strided_slice %0 {offsets = [0, 112], sizes = [2, 8], strides = [1, 1]} : vector<2x128xf32> to vector<2x8xf32>
    %29 = arith.addf %11, %28 : vector<2x8xf32>
    %30 = vector.extract_strided_slice %0 {offsets = [0, 104], sizes = [2, 8], strides = [1, 1]} : vector<2x128xf32> to vector<2x8xf32>
    %31 = arith.addf %29, %30 : vector<2x8xf32>
    %cst_6 = arith.constant 2.000000e+00 : f32
    %32 = vector.broadcast %cst_6 : f32 to vector<2x8xf32>
    %33 = arith.mulf %32, %11 : vector<2x8xf32>
    %34 = arith.addf %31, %33 : vector<2x8xf32>
    %cst_7 = arith.constant 2.000000e-01 : f32
    %35 = vector.broadcast %cst_7 : f32 to vector<2x8xf32>
    %36 = arith.mulf %34, %35 : vector<2x8xf32>
    %37 = vector.extract_strided_slice %0 {offsets = [0, 96], sizes = [2, 8], strides = [1, 1]} : vector<2x128xf32> to vector<2x8xf32>
    %38 = arith.addf %31, %37 : vector<2x8xf32>
    %cst_8 = arith.constant 1.000000e+00 : f32
    %39 = vector.broadcast %cst_8 : f32 to vector<2x8xf32>
    %40 = arith.mulf %39, %11 : vector<2x8xf32>
    %41 = arith.addf %38, %40 : vector<2x8xf32>
    %cst_9 = arith.constant 2.000000e-01 : f32
    %42 = vector.broadcast %cst_9 : f32 to vector<2x8xf32>
    %43 = arith.mulf %41, %42 : vector<2x8xf32>
    %44 = vector.extract_strided_slice %9 {offsets = [0, 16], sizes = [2, 96], strides = [1, 1]} : vector<2x128xf32> to vector<2x96xf32>
    %45 = tpu.concatenate %20, %27, %44, %43, %36 in 1 : vector<2x8xf32>, vector<2x8xf32>, vector<2x96xf32>, vector<2x8xf32>, vector<2x8xf32> -> vector<2x128xf32>
    %46 = arith.subf %0, %45 : vector<2x128xf32>
    %c0_10 = arith.constant 0 : index
    %c0_11 = arith.constant 0 : index
    %47 = vector.load %arg2[%c0_10, %c0_11] : memref<2x128xf32, #tpu.memory_space<vmem>>, vector<2x128xf32>
    tpu.vector_store %arg2[%c0_10, %c0_11], %46 {strides = array<i32>} : memref<2x128xf32, #tpu.memory_space<vmem>>, vector<2x128xf32>,
    %c0_12 = arith.constant 0 : index
    %c0_13 = arith.constant 0 : index
    %48 = vector.load %arg3[%c0_12, %c0_13] : memref<2x128xf32, #tpu.memory_space<vmem>>, vector<2x128xf32>
    tpu.vector_store %arg3[%c0_12, %c0_13], %45 {strides = array<i32>} : memref<2x128xf32, #tpu.memory_space<vmem>>, vector<2x128xf32>,
    return
  }
  func.func @transform_0(%arg0: i32) -> (i32, i32) {
    %c0_i32 = arith.constant 0 : i32
    %c0_i32_0 = arith.constant 0 : i32
    return %arg0, %c0_i32 : i32, i32
  }
  func.func @transform_1(%arg0: i32) -> (i32, i32) {
    %c0_i32 = arith.constant 0 : i32
    %c0_i32_0 = arith.constant 0 : i32
    return %arg0, %c0_i32 : i32, i32
  }
  func.func @transform_2(%arg0: i32) -> (i32, i32) {
    %c0_i32 = arith.constant 0 : i32
    %c0_i32_0 = arith.constant 0 : i32
    return %arg0, %c0_i32 : i32, i32
  }
}

</mosaic_0001>

<bundles_post_ra>
// kernel: tpu_custom_call.1
= control target key start
LH: loop header
LB: loop body
LE: loop exit
PB: predicated region body
PF: predicated region fallthrough
CT: control target
= control target key end

     0   :  { %8 = vsyncpa [#allocation3], 0  ;;  %s266_s0 = inlined_call_operand.hbm [shape: f32[2,128], index: 0, kind: input, shape index: {}]   ;;  %s267_s1 = inlined_call_operand.hbm [shape: f32[2,128], index: 1, kind: output, shape index: {0}]   ;;  %s268_s2 = inlined_call_operand.hbm [shape: f32[2,128], index: 2, kind: output, shape index: {1}]  }
   0x1   :  { %9 = vsyncpa [#allocation4], 0 }
   0x2   :  { %10 = vsyncpa [#allocation7], 0  ;;  %s16_s11 = sshll.u32 %s266_s0, 4  ;;  %s212_s12 = smov [#allocation2]   ;;  %s17_s11 = int_to_ptr.hbm [resolvable:$true] %s16_s11 }
   0x3   :  { %s18_s13 = sshll.u32 %s212_s12, 4  ;;  %s19_s13 = int_to_ptr.vmem [resolvable:$true] %s18_s13 }
   0x4   :  { %21 = dma.hbm_to_vmem [thread:$0]  %s17_s11, 32, %s19_s13, [#allocation3]  }
   0x5   :  { %206 = dma.done.wait [#allocation3], 32  }
   0x6   :  { %207 = vsyncadd [#allocation3], 4294967264  ;;  %v239_v0 = vld [vmem:[#allocation2] sm:$0x3]  ;;  %s213_s14 = smov 120   ;;  %s214_s15 = smov 8  }
   0x7   :  { %27 = vrot.lane.b32.xlu0 %v239_v0, %s213_s14  ;;  %40 = vrot.lane.b32.xlu1 %v239_v0, %s213_s14  ;;  %s215_s0 = smov 112   ;;  %s216_s16 = smov 104   ;;  %v48_v23 = vmul.f32 2.0, %v239_v0  ;;  %vm81_vm0 = vcmask 64512   ;;  %vm83_vm1 = vcmask 130048   ;;  %vm85_vm2 = vcmask 916480  }
   0x8   :  { %57 = vrot.lane.b32.xlu2 %v239_v0, %s214_s15  ;;  %s217_s17 = smov 24   ;;  %s218_s18 = smov 16   ;;  %vm87_vm3 = vcmask 982016  }
   0x9   :  { %s219_s19 = smov [#allocation6]   ;;  %s110_s23 = sshll.u32 %s268_s2, 4  ;;  %s111_s23 = int_to_ptr.hbm [resolvable:$true] %s110_s23 }
   0xa   :  { %s108_s20 = sshll.u32 %s219_s19, 4  ;;  %s220_s24 = smov [#allocation5]   ;;  %s109_s20 = int_to_ptr.vmem [resolvable:$true] %s108_s20 }
   0xb   :  { %s97_s25 = sshll.u32 %s220_s24, 4  ;;  %s99_s28 = sshll.u32 %s267_s1, 4  ;;  %s98_s25 = int_to_ptr.vmem [resolvable:$true] %s97_s25  ;;  %s100_s28 = int_to_ptr.hbm [resolvable:$true] %s99_s28 }
   0xf   :  { %44 = vrot.lane.b32.xlu1 %v239_v0, %s215_s0 }
  0x10   :  { %51 = vrot.lane.b32.xlu2 %v239_v0, %s216_s16 }
  0x17   :  { %67 = vrot.lane.b32.xlu1 %v239_v0, %s217_s17 }
  0x62   :  { %v58_v1 = vpop.permute.xlu2 %57 }
  0x63   :  { %v60_v14 = vadd.f32 %v58_v1, %v239_v0 }
  0x6a   :  { %v52_v7 = vpop.permute.xlu2 %51 }
  0x79   :  { %v28_v2 = vpop.permute.xlu0 %27  ;;  %v41_v3 = vpop.permute.xlu1 %40 }
  0x7a   :  { %v29_v4 = vadd.f32 %v28_v2, %v239_v0  ;;  %v43_v5 = vadd.f32 %v41_v3, %v239_v0 }
  0x7c   :  { %30 = vrot.lane.b32.xlu0 %v29_v4, %s215_s0 }
  0x81   :  { %v45_v6 = vpop.permute.xlu1 %44 }
  0x82   :  { %v47_v8 = vadd.f32 %v45_v6, %v43_v5 }
  0x84   :  { %61 = vrot.lane.b32.xlu0 %v239_v0, %s218_s18  ;;  %v54_v9 = vadd.f32 %v52_v7, %v47_v8  ;;  %v49_v24 = vadd.f32 %v48_v23, %v47_v8 }
  0x86   :  { %v55_v10 = vadd.f32 %v54_v9, %v239_v0  ;;  %v50_v25 = vmul.f32 0.2, %v49_v24 }
  0x88   :  { %v56_v11 = vmul.f32 0.2, %v55_v10 }
  0x89   :  { %v68_v16 = vpop.permute.xlu1 %67 }
  0x8a   :  { %74 = vrot.lane.b32.xlu1 %v56_v11, %s214_s15 }
  0xee   :  { %v31_v12 = vpop.permute.xlu0 %30 }
  0xef   :  { %v32_v13 = vadd.f32 %v31_v12, %v29_v4 }
  0xf1   :  { %33 = vrot.lane.b32.xlu2 %v32_v13, %s213_s14 }
  0xf6   :  { %v62_v15 = vpop.permute.xlu0 %61 }
  0xf7   :  { %v64_v17 = vadd.f32 %v62_v15, %v60_v14 }
  0xf9   :  { %v70_v18 = vadd.f32 %v68_v16, %v64_v17  ;;  %v65_v26 = vadd.f32 %v64_v17, %v48_v23 }
  0xfb   :  { %v71_v19 = vadd.f32 %v70_v18, %v239_v0  ;;  %v66_v31 = vmul.f32 0.2, %v65_v26 }
  0xfc   :  { %v75_v27 = vpop.permute.xlu1 %74 }
  0xfd   :  { %v72_v20 = vmul.f32 0.2, %v71_v19  ;;  %v82_v30 = vsel %vm81_vm0, %v50_v25, %v75_v27 }
  0xff   :  { %78 = vrot.lane.b32.xlu2 %v72_v20, %s213_s14 }
 0x14b   :  { %v34_v21 = vpop.permute.xlu2 %33 }
 0x14c   :  { %v35_v22 = vadd.f32 %v34_v21, %v239_v0 }
 0x14e   :  { %36 = vrot.lane.b32.xlu0 %v35_v22, %s218_s18 }
 0x159   :  { %v79_v32 = vpop.permute.xlu2 %78 }
 0x1c0   :  { %v37_v28 = vpop.permute.xlu0 %36 }
 0x1c1   :  { %v38_v29 = vmul.f32 0.2, %v37_v28 }
 0x1c3   :  { %v84_v33 = vsel %vm83_vm1, %v82_v30, %v38_v29 }
 0x1c4   :  { %v86_v34 = vsel %vm85_vm2, %v84_v33, %v79_v32 }
 0x1c5   :  { %v88_v35 = vsel %vm87_vm3, %v86_v34, %v66_v31 }
 0x1c6   :  { %v89_v36 = vsub.f32 %v239_v0, %v88_v35  ;;  %91 = vst [vmem:[#allocation6] sm:$0x3] %v88_v35 }
 0x1c7   :  { %113 = dma.vmem_to_hbm [thread:$0]  %s109_s20, 32, %s111_s23, [#allocation7]  }
 0x1c8   :  { %90 = vst [vmem:[#allocation5] sm:$0x3] %v89_v36 }
 0x1c9   :  { %102 = dma.vmem_to_hbm [thread:$0]  %s98_s25, 32, %s100_s28, [#allocation4]  }
 0x1ca   :  { %208 = dma.done.wait [#allocation4], 32  }
 0x1cb   :  { %209 = vsyncadd [#allocation4], 4294967264 }
 0x1cc   :  { %210 = dma.done.wait [#allocation7], 32  }
 0x1cd   :  { %211 = vsyncadd [#allocation7], 4294967264 }
 0x1ce   :  { %122 = vsyncpa [#allocation3], 1 }
 0x1cf   :  { %123 = vsyncpa [#allocation4], 1 }
 0x1d0   :  { %124 = vsyncpa [#allocation7], 1 }

</bundles_post_ra>
